<compile_context>
chip_gen: v5e
topology: v5e:2x2
jax: 0.10.0
libtpu: 0.0.40
codegen_flags: <defaults>
</compile_context>

<pallas_src>
import functools

import jax
import jax.numpy as jnp
from jax.experimental import pallas as pl
from jax.experimental.pallas import tpu as pltpu

BETA = 0.2


# ----------------------------------------------------------------------------
# Pallas kernel: one gathered node row per grid step.
#   z[ids[i], :] = BETA * z[ids[i], :] + (1 - BETA) * records[i, :]
# ----------------------------------------------------------------------------
def _record_row_kernel(ids_ref, z_ref, r_ref, o_ref):
    # ids_ref (SMEM) only drives the index maps; not needed in the body.
    del ids_ref
    o_ref[...] = BETA * z_ref[...] + (1.0 - BETA) * r_ref[...]


@functools.partial(jax.jit, donate_argnums=(0,))
def _record_update(z, nodes_id, records):
    """Fused gather + blend + scatter, in place on z (donated & aliased)."""
    n, f = z.shape
    k = records.shape[0]

    # Lift rows to (rows, 1, f): the last two block dims (1, f) equal the full
    # array dims, so 1-row blocks are legal for any n / k (ragged k is fine).
    z3 = z.reshape(n, 1, f)
    r3 = records.reshape(k, 1, f)

    out = pl.pallas_call(
        _record_row_kernel,
        out_shape=jax.ShapeDtypeStruct((n, 1, f), z.dtype),
        grid_spec=pltpu.PrefetchScalarGridSpec(
            num_scalar_prefetch=1,  # nodes_id -> SMEM, consumed by index maps
            grid=(k,),
            in_specs=[
                # z: data-dependent row gather driven by the prefetched ids.
                pl.BlockSpec((1, 1, f), lambda i, ids: (ids[i], 0, 0)),
                # records: row i.
                pl.BlockSpec((1, 1, f), lambda i, ids: (i, 0, 0)),
            ],
            # Scatter: write the blended row straight back to row ids[i].
            out_specs=pl.BlockSpec((1, 1, f), lambda i, ids: (ids[i], 0, 0)),
        ),
        # z (operand index 1, after the scalar-prefetch operand) is aliased to
        # the output: untouched rows are never read or written; only the k
        # updated rows generate HBM traffic.
        input_output_aliases={1: 0},
        compiler_params=pltpu.CompilerParams(
            # "arbitrary": the sequential grid keeps last-write-wins ordering
            # if nodes_id ever contains duplicates (matches torch's in-place
            # indexed assignment closely enough; duplicates are best avoided).
            dimension_semantics=("arbitrary",),
        ),
    )(nodes_id, z3, r3)
    return out.reshape(n, f)


# ----------------------------------------------------------------------------
# JAX-side module equivalents (glue only; the compute lives in the kernel)
# ----------------------------------------------------------------------------
class Graph:
    """Minimal stand-in for a DGL graph: holds node data dict `ndata`."""

    def __init__(self, num_nodes, hidden, key):
        self.ndata = {
            "z": jax.random.normal(key, (num_nodes, hidden), dtype=jnp.float32)
        }


class GNNLayer:
    def forward_from_record(self, g, h):
        # Matches the PyTorch module: `h` is ignored and the node record
        # tensor is returned as-is (identity read-out -> no copy kernel).
        return g.ndata["z"]


class GNN:
    def __init__(self, in_feats, hidden_size, num_classes):
        # No parameters are created in the original module either.
        self.gnn = GNNLayer()

    def record(self, g, nodes_id, records):
        nodes_id = jnp.asarray(nodes_id, dtype=jnp.int32)
        records = jnp.asarray(records, dtype=g.ndata["z"].dtype)
        # TODO(synk): duplicate indices in nodes_id follow grid order
        # (last-write-wins); pass unique indices for fully defined semantics.
        g.ndata["z"] = _record_update(g.ndata["z"], nodes_id, records)

    def forward(self, g, features):
        return self.gnn.forward_from_record(g, features)


# ----------------------------------------------------------------------------
# Demo / self-test
# ----------------------------------------------------------------------------
if __name__ == "__main__":
    key = jax.random.PRNGKey(0)
    k_z, k_feat, k_rec = jax.random.split(key, 3)

    num_nodes = 16
    in_feats = 4
    hidden = 128
    num_classes = 4

    g = Graph(num_nodes, hidden, k_z)
    features = jax.random.normal(k_feat, (num_nodes, in_feats), dtype=jnp.float32)
    model = GNN(in_feats, hidden, num_classes)

    # Update a ragged subset of rows (k=5, deliberately not a multiple of 8).
    nodes_id = jnp.array([1, 3, 4, 10, 11], dtype=jnp.int32)
    records = jax.random.normal(
        k_rec, (nodes_id.shape[0], hidden), dtype=jnp.float32
    )

    # Reference result, computed BEFORE the in-place (donated) update.
    z0 = g.ndata["z"]
    expected = z0.at[nodes_id, :].set(
        BETA * z0[nodes_id, :] + (1.0 - BETA) * records
    )
    expected = jax.block_until_ready(expected)
    del z0  # buffer is donated by record(); do not touch it afterwards

    model.record(g, nodes_id, records)   # Pallas fused gather/blend/scatter
    out = model.forward(g, features)     # identity read-out of g.ndata['z']
    out = jax.block_until_ready(out)

    assert out.shape == (num_nodes, hidden)
    assert out.dtype == jnp.float32
    assert jnp.allclose(out, expected, atol=1e-6)
    print("KERNEL_OK")
</pallas_src>

<mosaic_0001>
module attributes {stable_mosaic.version = 11 : i64} {
  func.func @_record_row_kernel(%arg0: i32, %arg1: memref<5xi32, #tpu.memory_space<smem>>, %arg2: memref<1x1x128xf32, #tpu.memory_space<vmem>>, %arg3: memref<1x1x128xf32, #tpu.memory_space<vmem>>, %arg4: memref<1x1x128xf32, #tpu.memory_space<vmem>>) attributes {dimension_semantics = [#tpu.dimension_semantics<arbitrary>], iteration_bounds = array<i64: 5>, scalar_prefetch = 1 : i64, scratch_operands = 0 : i64, tpu.core_type = #tpu.core_type<tc>, window_params = [{transform_indices = @transform_0, window_bounds = array<i64: 1, 1, 128>}, {transform_indices = @transform_1, window_bounds = array<i64: 1, 1, 128>}, {transform_indices = @transform_2, window_bounds = array<i64: 1, 1, 128>}]} {
    %c0 = arith.constant 0 : index
    %c0_0 = arith.constant 0 : index
    %c0_1 = arith.constant 0 : index
    %0 = vector.load %arg2[%c0, %c0_0, %c0_1] : memref<1x1x128xf32, #tpu.memory_space<vmem>>, vector<1x1x128xf32>
    %cst = arith.constant 2.000000e-01 : f32
    %1 = vector.broadcast %cst : f32 to vector<1x1x128xf32>
    %2 = arith.mulf %1, %0 : vector<1x1x128xf32>
    %c0_2 = arith.constant 0 : index
    %c0_3 = arith.constant 0 : index
    %c0_4 = arith.constant 0 : index
    %3 = vector.load %arg3[%c0_2, %c0_3, %c0_4] : memref<1x1x128xf32, #tpu.memory_space<vmem>>, vector<1x1x128xf32>
    %cst_5 = arith.constant 8.000000e-01 : f32
    %4 = vector.broadcast %cst_5 : f32 to vector<1x1x128xf32>
    %5 = arith.mulf %4, %3 : vector<1x1x128xf32>
    %6 = arith.addf %2, %5 : vector<1x1x128xf32>
    %c0_6 = arith.constant 0 : index
    %c0_7 = arith.constant 0 : index
    %c0_8 = arith.constant 0 : index
    %7 = vector.load %arg4[%c0_6, %c0_7, %c0_8] : memref<1x1x128xf32, #tpu.memory_space<vmem>>, vector<1x1x128xf32>
    tpu.vector_store %arg4[%c0_6, %c0_7, %c0_8], %6 {strides = array<i32>} : memref<1x1x128xf32, #tpu.memory_space<vmem>>, vector<1x1x128xf32>,
    return
  }
  func.func @transform_0(%arg0: i32, %arg1: memref<5xi32, #tpu.memory_space<smem>>) -> (i32, i32, i32) {
    %0 = arith.index_cast %arg0 : i32 to index
    %1 = memref.load %arg1[%0] : memref<5xi32, #tpu.memory_space<smem>>
    %c0_i32 = arith.constant 0 : i32
    %c0_i32_0 = arith.constant 0 : i32
    %c0_i32_1 = arith.constant 0 : i32
    return %1, %c0_i32, %c0_i32_0 : i32, i32, i32
  }
  func.func @transform_1(%arg0: i32, %arg1: memref<5xi32, #tpu.memory_space<smem>>) -> (i32, i32, i32) {
    %c0_i32 = arith.constant 0 : i32
    %c0_i32_0 = arith.constant 0 : i32
    %c0_i32_1 = arith.constant 0 : i32
    return %arg0, %c0_i32, %c0_i32_0 : i32, i32, i32
  }
  func.func @transform_2(%arg0: i32, %arg1: memref<5xi32, #tpu.memory_space<smem>>) -> (i32, i32, i32) {
    %0 = arith.index_cast %arg0 : i32 to index
    %1 = memref.load %arg1[%0] : memref<5xi32, #tpu.memory_space<smem>>
    %c0_i32 = arith.constant 0 : i32
    %c0_i32_0 = arith.constant 0 : i32
    %c0_i32_1 = arith.constant 0 : i32
    return %1, %c0_i32, %c0_i32_0 : i32, i32, i32
  }
}

</mosaic_0001>

<bundles_post_ra>
// kernel: _record_update.1
= control target key start
LH: loop header
LB: loop body
LE: loop exit
PB: predicated region body
PF: predicated region fallthrough
CT: control target
= control target key end

     0   :  { %s496_s15 = smov [#allocation3]   ;;  %s687_s0 = inlined_call_operand.vmem [shape: s32[5], index: 0, kind: input, shape index: {}]   ;;  %s688_s1 = inlined_call_operand.hbm [shape: f32[16,1,128], index: 1, kind: input, shape index: {}, may-alias: {1,3}]   ;;  %s689_s2 = inlined_call_operand.vmem [shape: f32[5,1,128], index: 2, kind: input, shape index: {}]   ;;  %s690_s3 = inlined_call_operand.hbm [shape: f32[16,1,128], index: 3, kind: output, shape index: {}, may-alias: {1,3}]  }
   0x1   :  { %s9_s14 = sshll.u32 %s687_s0, 4  ;;  %s10_s14 = int_to_ptr.vmem [resolvable:$true] %s9_s14 }
   0x2   :  { %12 = dma.vmem_to_smem %s10_s14, 16, %s496_s15, [#allocation2] }
   0x3   :  { %458 = dma.done.wait [#allocation2], 16 }
   0x4   :  { %459 = vsyncadd [#allocation2], 4294967280 }
   0x5   :  { %15 = sfence }
   0x6   :  { %16 = vsyncpa [#allocation5], 0 }
   0x7   :  { %18 = vsyncpa [#allocation5 + $0x1], 0 }
   0x8   :  { %19 = vsyncpa [#allocation6], 0 }
   0x9   :  { %21 = vsyncpa [#allocation6 + $0x1], 0  ;;  %s520_s16 = smov 0   ;;  %s522_s17 = smov 0  }
   0xa   :  { %s524_s18 = smov 0   ;;  %s526_s19 = smov 0  }
   0xb   :  { %s528_s20 = smov 0   ;;  %s530_s0 = smov 0  }
   0xc   :  { %s532_s21 = smov 0  }
   0xd LB: > { %692 = sst [smem:[#allocation14_spill]] %s490_s0  ;;  %s554_s22 = sadd.s32 4294967295, %s494_s21   ;;  %s494_s21 = sphi %s532_s21, %s707_s21   ;;  %s490_s0 = sphi %s530_s0, %s701_s0   ;;  %s486_s20 = sphi %s528_s20, %s706_s20   ;;  %s482_s19 = sphi %s526_s19, %s705_s19   ;;  %s478_s18 = sphi %s524_s18, %s704_s18   ;;  %s474_s17 = sphi %s522_s17, %s703_s17   ;;  %s470_s16 = sphi %s520_s16, %s702_s16  }
   0xe   : > { %s277_s23 = sadd.s32 4294967294, %s494_s21   ;;  %s558_s24 = sadd.s32 1, %s494_s21  }
   0xf   : > { %s31_s25 = sld [smem:[#allocation3 + %s494_s21]]  ;;  %s36_s27 = sadd.s32 1, %s490_s0 }
  0x10   : > { %s32_s26 = sld [smem:[#allocation3 + %s558_s24]]  ;;  %p43_p0 = scmp.ne.s32.totalorder %s490_s0, %s486_s20 }
  0x11   : > { %p44_p1 = scmp.eq.s32.totalorder %s494_s21, 0  ;;  %p49_p2 = scmp.ne.s32.totalorder %s486_s20, %s482_s19 }
  0x12   : > { %p50_p3 = scmp.eq.s32.totalorder %s554_s22, 0  ;;  %s85_s29 = sld [smem:[#allocation3 + %s494_s21]] }
  0x13   : > { %p568_p4 = por %p44_p1, %p43_p0  ;;  %s86_s4 = sld [smem:[#allocation3 + %s558_s24]] }
  0x14   : > { %p573_p5 = por %p50_p3, %p49_p2  ;;  %s90_s5 = sadd.s32 1, %s478_s18 }
  0x15   : > { %p100_p6 = scmp.ne.s32.totalorder %s478_s18, %s474_s17  ;;  %p101_p7 = scmp.eq.s32.totalorder %s554_s22, 4 }
  0x16   : > { %s33_s6 = ssub.s32 %s31_s25, %s32_s26  ;;  %p106_p9 = scmp.ne.s32.totalorder %s474_s17, %s470_s16 }
  0x17   : > { %p34_p8 = scmp.eq.s32.totalorder %s33_s6, 0  ;;  %p584_p10 = por %p101_p7, %p100_p6 }
  0x18   : > { %p107_p11 = scmp.eq.s32.totalorder %s277_s23, 4  ;;  %p301_p0 = scmp.lt.s32.totalorder %s494_s21, 5 }
  0x19   : > { %s589_s8 = scalar_select %p34_p8, %s490_s0, %s36_s27  }
  0x1a   : > { %s87_s9 = ssub.s32 %s85_s29, %s86_s4  ;;  %p591_p12 = por %p107_p11, %p106_p9 }
  0x1b   : > { %696 = sst [smem:[#allocation15_spill]] %s589_s8  ;;  %p88_p13 = scmp.eq.s32.totalorder %s87_s9, 0 }
  0x1c   : > { %s127_s12 = sand.u32 1, %s490_s0   ;;  %p607_p1 = pnand %p301_p0, %p568_p4 }
  0x1d   : > { %s597_s11 = scalar_select %p88_p13, %s478_s18, %s90_s5  }
  0x1e   : > { %s283_s13 = scalar_select %p568_p4, [#allocation3], [#allocation8] }
  0x1f   : > { %s284_s14 = scalar_select %p568_p4, %s494_s21, 0 }
  0x20   : > { %s709_s13 = smov (!%p301_p0, %s283_s13), [#allocation10]  ;;  %p280_p2 = scmp.ge.s32.totalorder %s494_s21, 1 }
  0x21   : > { %s711_s14 = smov (!%p301_p0, %s284_s14), 0  ;;  %p149_p3 = scmp.lt.s32.totalorder %s494_s21, 6 }
  0x22   : > { %s131_s19 = sld [smem:[%s709_s13 + %s711_s14]]  ;;  %s130_s23 = scalar_lea.vmem [#allocation4], %s127_s12 }
  0x23   : > { %s138_s25 = sshll.u32 %s130_s23, 4  ;;  %p613_p6 = pnand %p280_p2, %p149_p3  ;;  %s139_s25 = int_to_ptr.vmem [resolvable:$true] %s138_s25 }
  0x24   : > { %s128_s5 = scalar_lea.sflag [#allocation5], %s127_s12  ;;  %p376_p7 = pneg %p607_p1 }
  0x25   : > { %s379_s23 = scalar_lea.hbm %s688_s1, 16 }
  0x28   : > { %s134_s4 = scalar_lea.hbm %s688_s1, %s131_s19 }
  0x29   : > { %s136_s28 = sshll.u32 %s134_s4, 4  ;;  %s137_s28 = int_to_ptr.hbm [resolvable:$true] %s136_s28 }
  0x2a   : > { %s372_s6 = sshra.s32 %s137_s28, 4  ;;  %s373_s6 = int_to_ptr.hbm [resolvable:$true] %s372_s6 }
  0x2b   : > { %s374_s9 = scalar_lea.hbm %s373_s6, 1  ;;  %p380_p11 = scmp.lt.s32.totalorder %s373_s6, %s688_s1 }
  0x2c   : > { %p375_p4 = scmp.ne.s32.totalorder %s373_s6, %s374_s9  ;;  %p381_p13 = scmp.lt.s32.totalorder %s379_s23, %s374_s9 }
  0x2e   : > { %p377_p8 = pnand %p376_p7, %p375_p4  ;;  %p382_p0 = por %p381_p13, %p380_p11 }
  0x30   : > { %p378_p9 = pneg %p377_p8 }
  0x32   : > { %p383_p2 = pnand %p382_p0, %p378_p9 }
  0x34   : > { %386 = shalt.err (!%p383_p2)
}
  0x35   : > { %296 = dma.hbm_to_vmem [thread:$0]  (!%p607_p1), %s137_s28, 16, %s139_s25, %s128_s5  }
  0x36   : > { %153 = sbr.rel (%p613_p6) target bundleno = 83 (0x53), region = 28  ;;  %s155_s12 = sand.u32 (!%p613_p6), 1, %s486_s20  }
  0x37   : > { %s156_s19 = scalar_lea.sflag (!%p613_p6), [#allocation5], %s155_s12  ;;  %s158_s27 = scalar_lea.vmem (!%p613_p6), [#allocation4], %s155_s12 }
  0x3b   : > { %461 = dma.done.wait (%p573_p5), %s156_s19, 16  }
  0x3c   : > { %463 = vsyncadd (%p573_p5), %s156_s19, 4294967280  ;;  %s287_s0 = scalar_select %p584_p10, [#allocation3], [#allocation9]  ;;  %v186_v0 = vld [vmem:[%s158_s27] sm:$0x1] }
  0x3d   : > { %s288_s8 = scalar_select %p584_p10, %s554_s22, 0  ;;  %v187_v2 = vmul.f32 0.2, %v186_v0 }
  0x3e   : > { %s179_s15 = sand.u32 1, %s474_s17   ;;  %p182_p1 = scmp.lt.s32.totalorder %s554_s22, 4 }
  0x3f   : > { %s199_s25 = sld [smem:[%s287_s0 + %s288_s8]]  ;;  %s180_s30 = scalar_lea.vmem [#allocation7], %s179_s15 }
  0x40   : > { %s713_s22 = smov (!%p182_p1, %s554_s22), 4  ;;  %s204_s28 = sshll.u32 %s180_s30, 4  ;;  %s205_s28 = int_to_ptr.vmem [resolvable:$true] %s204_s28 }
  0x41   : > { %s184_s4 = scalar_lea.vmem %s689_s2, %s713_s22  ;;  %s193_s14 = scalar_lea.sflag [#allocation6], %s179_s15 }
  0x42   : > { %v188_v1 = vld [vmem:[%s184_s4] sm:$0x1]  ;;  %s422_s27 = scalar_lea.hbm %s690_s3, 16 }
  0x43   : > { %v189_v3 = vmul.f32 0.8, %v188_v1 }
  0x45   : > { %s202_s9 = scalar_lea.hbm %s690_s3, %s199_s25  ;;  %v190_v4 = vadd.f32 %v189_v3, %v187_v2 }
  0x46   : > { %s206_s13 = sshll.u32 %s202_s9, 4  ;;  %s207_s13 = int_to_ptr.hbm [resolvable:$true] %s206_s13 }
  0x47   : > { %191 = vst [vmem:[%s180_s30] sm:$0x1] %v190_v4  ;;  %s416_s23 = sshra.s32 %s207_s13, 4  ;;  %s417_s23 = int_to_ptr.hbm [resolvable:$true] %s416_s23 }
  0x48   : > { %s418_s22 = scalar_lea.hbm %s417_s23, 1  ;;  %p423_p4 = scmp.lt.s32.totalorder %s417_s23, %s690_s3 }
  0x49   : > { %p419_p5 = scmp.ne.s32.totalorder %s417_s23, %s418_s22  ;;  %p424_p7 = scmp.lt.s32.totalorder %s422_s27, %s418_s22 }
  0x4b   : > { %p420_p3 = pnand %p419_p5, %p584_p10  ;;  %p425_p8 = por %p424_p7, %p423_p4 }
  0x4d   : > { %p421_p6 = pneg %p420_p3 }
  0x4f   : > { %p426_p9 = pnand %p425_p8, %p421_p6 }
  0x51   : > { %429 = shalt.err (!%p426_p9)
}
  0x52   : > { %289 = dma.vmem_to_hbm [thread:$0]  (%p584_p10), %s205_s28, 16, %s207_s13, %s193_s14  }
  0x53 PF: > { %p302_p11 = scmp.ge.s32.totalorder %s494_s21, 2  ;;  %s218_s15 = sand.u32 1, %s470_s16  }
  0x54   : > { %s219_s25 = scalar_lea.sflag [#allocation6], %s218_s15 }
  0x55   : > { %p298_p13 = pnand %p302_p11, %p591_p12 }
  0x57   : > { %p299_p0 = pneg %p298_p13 }
  0x59   : > { %465 = dma.done.wait (%p299_p0), %s219_s25, 16  }
  0x5a   : > { %467 = vsyncadd (%p299_p0), %s219_s25, 4294967280  ;;  %s700_s26 = sld [smem:[#allocation14_spill]]  ;;  %p24_p10 = scmp.ge.s32.totalorder %s558_s24, 7  }
  0x5b   : > { %s701_s0 = sld [smem:[#allocation15_spill]]  ;;  %s702_s16 = smov %s474_s17 }
  0x5c   : > { %s703_s17 = smov %s478_s18  ;;  %s704_s18 = smov %s597_s11 }
  0x5d   : > { %s705_s19 = smov %s486_s20  ;;  %s707_s21 = smov %s558_s24 }
  0x5e   :  { %26 = sbr.rel (!%p24_p10) target bundleno = 13 (0xd), region = 76 }
  0x60   : > { %s706_s20 = smov %s700_s26 }
  0x63   :  { %224 = vsyncpa [#allocation5], 1 }
  0x64   :  { %226 = vsyncpa [#allocation5 + $0x1], 1 }
  0x65   :  { %227 = vsyncpa [#allocation6], 1 }
  0x66   :  { %229 = vsyncpa [#allocation6 + $0x1], 1 }

</bundles_post_ra>
